<compile_context>
chip_gen: v5e
topology: v5e:2x2
jax: 0.10.0
libtpu: 0.0.40
codegen_flags: <defaults>
</compile_context>

<pallas_src>
import functools

import jax
import jax.numpy as jnp
from jax.experimental import pallas as pl
from jax.experimental.pallas import tpu as pltpu


def _round_up(v, m):
    return ((v + m - 1) // m) * m


def _vmem_capacity_bytes():
    """Physical per-core VMEM (generation aware), with a safe fallback."""
    try:
        cap = getattr(pltpu.get_tpu_info(), "vmem_capacity_bytes", None)
        if cap:
            return int(cap)
    except Exception:
        pass
    kind = jax.devices()[0].device_kind.lower()
    if "v7" in kind:
        return 64 * 1024 * 1024          # v7x: 64 MiB per TensorCore
    return 128 * 1024 * 1024             # v5e / v6e (and v4): 128 MiB


def _fused_gine_kernel(x0_ref, eattr_ref, src_ref, tgt_ref,
                       w1_ref, b1_ref, w2_ref, b2_ref,
                       out_ref, *scratch, eps, n_valid, cache_onehot):
    agg_ref = scratch[0]
    l = pl.program_id(0)                 # layer index      (carried   -> arbitrary)
    t = pl.program_id(1)                 # edge-tile index  (reduction -> arbitrary)
    num_layers = pl.num_programs(0)
    num_tiles = pl.num_programs(1)

    # One-time init: node features become the resident output block (x carry).
    @pl.when((l == 0) & (t == 0))
    def _():
        out_ref[...] = x0_ref[...]

    # Per-layer init of the aggregation accumulator.
    @pl.when(t == 0)
    def _():
        agg_ref[...] = jnp.zeros_like(agg_ref)

    x = out_ref[...]                                     # (Np, Hp) f32 carry
    x_bf = x.astype(jnp.bfloat16)                        # bf16 MXU operand
    n_nodes, hp = x.shape
    te = tgt_ref.shape[1]

    # bf16 one-hot gather/scatter operators (0/1 exact in bf16): half the VMEM
    # of f32 temporaries and direct single-pass bf16 MXU operands.
    def _build_onehots():
        src = src_ref[...]                               # (TE, 1) int32
        tgt = tgt_ref[...]                               # (1, TE) int32
        goh = (jax.lax.broadcasted_iota(jnp.int32, (te, n_nodes), 1)
               == src).astype(jnp.bfloat16)              # (TE, Np)
        soh = (jax.lax.broadcasted_iota(jnp.int32, (n_nodes, te), 0)
               == tgt).astype(jnp.bfloat16)              # (Np, TE)
        return goh, soh

    if cache_onehot:
        # Edge data is resident (single edge tile): build the operators once on
        # the first grid step and reuse them for every layer.
        goh_ref, soh_ref = scratch[1], scratch[2]

        @pl.when((l == 0) & (t == 0))
        def _():
            goh, soh = _build_onehots()
            goh_ref[...] = goh
            soh_ref[...] = soh

        gather_oh = goh_ref[...]
        scatter_oh = soh_ref[...]
    else:
        gather_oh, scatter_oh = _build_onehots()

    # GINEConv message + add-aggregation (bf16 MXU operands, f32 accumulation).
    xj = jnp.dot(gather_oh, x_bf, preferred_element_type=jnp.float32)   # x[src]
    msg = jnp.maximum(xj + eattr_ref[...].astype(jnp.float32), 0.0)     # relu msg
    agg_ref[...] += jnp.dot(scatter_oh, msg.astype(jnp.bfloat16),
                            preferred_element_type=jnp.float32)

    # Finalize this layer: GINE update + 2-layer MLP + encoder act + residual.
    @pl.when(t == num_tiles - 1)
    def _():
        out = agg_ref[...] + (1.0 + eps) * x
        h = jnp.dot(out.astype(jnp.bfloat16), w1_ref[0],
                    preferred_element_type=jnp.float32) + b1_ref[0]
        h = jnp.maximum(h, 0.0)
        h = jnp.dot(h.astype(jnp.bfloat16), w2_ref[0],
                    preferred_element_type=jnp.float32) + b2_ref[0]
        # Encoder-level activation on all but the last layer, blended into a
        # single unconditional full-width store.
        act_mask = jnp.full(h.shape, num_layers - 1 - l, jnp.int32) > 0
        h = jnp.where(act_mask, jnp.maximum(h, 0.0), h)
        new_x = h + x                                    # short_cut residual
        # Keep padded node rows exactly zero (they would otherwise accumulate
        # relu(b1) @ W2 + b2 every layer).
        row_ok = jax.lax.broadcasted_iota(jnp.int32, (n_nodes, hp), 0) < n_valid
        out_ref[...] = jnp.where(row_ok, new_x, 0.0).astype(out_ref.dtype)


def gin_encoder(z, edge_index, edge_attr, params, *, eps=0.0, edge_tile=None):
    f32, bf16 = jnp.float32, jnp.bfloat16
    node_emb = params["node_emb"]
    x0 = node_emb[z].astype(f32)              # (N, H) embedding lookup (XLA glue)
    N, H = x0.shape
    E = edge_index.shape[1]
    num_convs = len(params["convs"])

    src = edge_index[0].astype(jnp.int32)
    tgt = edge_index[1].astype(jnp.int32)

    # Padded sizes: sublanes to 16 (clean bf16 packing), lanes to 128 -- or 256
    # when H > 128 so the 256-wide v6e/v7x MXU N-dim is filled.
    Np = _round_up(max(N, 16), 16)
    lane_mult = 256 if H > 128 else 128
    Hp = _round_up(max(H, lane_mult), lane_mult)

    # ---- VMEM-budget-driven edge tile -------------------------------------
    vmem_cap = _vmem_capacity_bytes()
    budget = (vmem_cap * 4) // 5                  # ~20% headroom for the compiler
    per_edge = (4 * Np                            # two bf16 one-hot operators
                + 14 * Hp                         # bf16 edge_attr tile (x2) + xj/msg temps
                + 2 * 128 * 4 + 2 * 8 * 4)        # lane/sublane padding of src/tgt blocks
    fixed = (8 * Np * Hp * 4                      # x0 (x2 buf), out, agg, f32/bf16 temps
             + 2 * (2 * Hp * Hp * 2 + 2 * Hp * 4))  # double-buffered bf16 W + f32 b
    te_cap = max(128, (budget - fixed) // per_edge)
    if edge_tile is not None:
        te_cap = min(te_cap, int(edge_tile))
    te_cap = max(128, (te_cap // 128) * 128)

    Ep_min = _round_up(max(E, 128), 128)
    if Ep_min <= te_cap:
        TE = Ep = Ep_min
    else:
        TE = te_cap
        Ep = _round_up(E, TE)
    ET = Ep // TE
    cache_onehot = (ET == 1)

    # ---- padded / packed operands ------------------------------------------
    # Padded edges get the out-of-range index Np, so their one-hot rows/cols
    # are all zero and they contribute nothing.
    x0p = jnp.zeros((Np, Hp), f32).at[:N, :H].set(x0)
    eap = jnp.zeros((Ep, Hp), bf16).at[:E, :H].set(edge_attr.astype(bf16))
    srcp = jnp.full((Ep, 1), Np, jnp.int32).at[:E, 0].set(src)
    tgtp = jnp.full((1, Ep), Np, jnp.int32).at[0, :E].set(tgt)

    w1s, b1s, w2s, b2s = [], [], [], []
    for (w1, b1, w2, b2) in params["convs"]:
        w1s.append(jnp.zeros((Hp, Hp), bf16).at[:H, :H].set(w1.astype(bf16)))
        b1s.append(jnp.zeros((1, Hp), f32).at[:, :H].set(b1.astype(f32)))
        w2s.append(jnp.zeros((Hp, Hp), bf16).at[:H, :H].set(w2.astype(bf16)))
        b2s.append(jnp.zeros((1, Hp), f32).at[:, :H].set(b2.astype(f32)))
    w1a, b1a = jnp.stack(w1s), jnp.stack(b1s)     # (L, Hp, Hp) bf16 / (L, 1, Hp) f32
    w2a, b2a = jnp.stack(w2s), jnp.stack(b2s)

    est = fixed + per_edge * TE
    vmem_limit = int(min(max(2 * est, 8 * 1024 * 1024), budget))

    kernel = functools.partial(_fused_gine_kernel, eps=float(eps),
                               n_valid=int(N), cache_onehot=cache_onehot)

    scratch = [pltpu.VMEM((Np, Hp), jnp.float32)]          # agg accumulator
    if cache_onehot:
        scratch += [pltpu.VMEM((TE, Np), jnp.bfloat16),    # cached gather one-hot
                    pltpu.VMEM((Np, TE), jnp.bfloat16)]    # cached scatter one-hot

    out_padded = pl.pallas_call(
        kernel,
        out_shape=jax.ShapeDtypeStruct((Np, Hp), f32),
        grid=(num_convs, ET),
        in_specs=[
            pl.BlockSpec((Np, Hp), lambda l, t: (0, 0)),        # x0 (resident)
            pl.BlockSpec((TE, Hp), lambda l, t: (t, 0)),        # edge_attr tile (bf16)
            pl.BlockSpec((TE, 1), lambda l, t: (t, 0)),         # src indices
            pl.BlockSpec((1, TE), lambda l, t: (0, t)),         # tgt indices
            pl.BlockSpec((1, Hp, Hp), lambda l, t: (l, 0, 0)),  # W1 (per layer, bf16)
            pl.BlockSpec((1, 1, Hp), lambda l, t: (l, 0, 0)),   # b1 (f32)
            pl.BlockSpec((1, Hp, Hp), lambda l, t: (l, 0, 0)),  # W2 (per layer, bf16)
            pl.BlockSpec((1, 1, Hp), lambda l, t: (l, 0, 0)),   # b2 (f32)
        ],
        out_specs=pl.BlockSpec((Np, Hp), lambda l, t: (0, 0)),  # x carry
        scratch_shapes=scratch,
        compiler_params=pltpu.CompilerParams(
            dimension_semantics=("arbitrary", "arbitrary"),
            vmem_limit_bytes=vmem_limit),
    )(x0p, eap, srcp, tgtp, w1a, b1a, w2a, b2a)

    return out_padded[:N, :H]


def gin_encoder_reference(z, edge_index, edge_attr, params):
    # Pure-JAX f32 reference matching the PyTorch forward semantics.
    x = params["node_emb"][z]
    src, tgt = edge_index[0], edge_index[1]
    num_convs = len(params["convs"])
    for i in range(num_convs):
        w1, b1, w2, b2 = params["convs"][i]
        msg = jnp.maximum(x[src] + edge_attr, 0.0)
        agg = jnp.zeros_like(x).at[tgt].add(msg)
        out = agg + x
        h = jnp.maximum(out @ w1 + b1, 0.0) @ w2 + b2
        if i < num_convs - 1:
            h = jnp.maximum(h, 0.0)
        x = h + x
    return x


def _make_params(key, H, num_convs):
    keys = jax.random.split(key, 1 + num_convs)
    node_emb = jax.random.normal(keys[0], (100, H), jnp.float32) * 0.5
    convs = []
    scale = 1.0 / jnp.sqrt(jnp.float32(H))
    for i in range(num_convs):
        k1, k2, k3, k4 = jax.random.split(keys[1 + i], 4)
        w1 = jax.random.normal(k1, (H, H), jnp.float32) * scale
        b1 = jax.random.normal(k2, (1, H), jnp.float32) * 0.1
        w2 = jax.random.normal(k3, (H, H), jnp.float32) * scale
        b2 = jax.random.normal(k4, (1, H), jnp.float32) * 0.1
        convs.append((w1, b1, w2, b2))
    return {"node_emb": node_emb, "convs": convs}


if __name__ == "__main__":
    key = jax.random.PRNGKey(0)
    k_graph1, k_params1, k_graph2, k_params2 = jax.random.split(key, 4)

    # bf16 MXU operands (f32 accumulation) deviate slightly from the f32
    # reference; tolerance chosen accordingly.
    ATOL = RTOL = 1e-1

    # Test 1: small graph, single resident edge tile (cached one-hot path).
    N, E, H, NUM_CONVS = 16, 32, 32, 3
    kz, ks, kt, ke = jax.random.split(k_graph1, 4)
    z = jax.random.randint(kz, (N,), 0, 100)
    src = jax.random.randint(ks, (E,), 0, N)
    tgt = jax.random.randint(kt, (E,), 0, N)
    edge_index = jnp.stack([src, tgt], axis=0)                 # (2, E)
    edge_attr = jax.random.normal(ke, (E, H), jnp.float32)
    params = _make_params(k_params1, H, NUM_CONVS)

    out = jax.block_until_ready(gin_encoder(z, edge_index, edge_attr, params))
    ref = gin_encoder_reference(z, edge_index, edge_attr, params)
    assert out.shape == (N, H)
    assert jnp.allclose(out, ref, atol=ATOL, rtol=RTOL), "test1 mismatch"

    # Test 2: force a small edge tile so the multi-tile accumulator path
    # (one-hot operators rebuilt per tile) is exercised as well.
    N2, E2, H2 = 40, 200, 32
    kz, ks, kt, ke = jax.random.split(k_graph2, 4)
    z2 = jax.random.randint(kz, (N2,), 0, 100)
    src2 = jax.random.randint(ks, (E2,), 0, N2)
    tgt2 = jax.random.randint(kt, (E2,), 0, N2)
    edge_index2 = jnp.stack([src2, tgt2], axis=0)
    edge_attr2 = jax.random.normal(ke, (E2, H2), jnp.float32)
    params2 = _make_params(k_params2, H2, NUM_CONVS)

    out2 = jax.block_until_ready(
        gin_encoder(z2, edge_index2, edge_attr2, params2, edge_tile=128))
    ref2 = gin_encoder_reference(z2, edge_index2, edge_attr2, params2)
    assert out2.shape == (N2, H2)
    assert jnp.allclose(out2, ref2, atol=ATOL, rtol=RTOL), "test2 mismatch"

    print("KERNEL_OK")
</pallas_src>

<mosaic_0001>
module attributes {stable_mosaic.version = 11 : i64} {
  func.func @_fused_gine_kernel(%arg0: i32, %arg1: i32, %arg2: memref<16x128xf32, #tpu.memory_space<vmem>>, %arg3: memref<128x128xbf16, #tpu.memory_space<vmem>>, %arg4: memref<128x1xi32, #tpu.memory_space<vmem>>, %arg5: memref<1x128xi32, #tpu.memory_space<vmem>>, %arg6: memref<1x128x128xbf16, #tpu.memory_space<vmem>>, %arg7: memref<1x1x128xf32, #tpu.memory_space<vmem>>, %arg8: memref<1x128x128xbf16, #tpu.memory_space<vmem>>, %arg9: memref<1x1x128xf32, #tpu.memory_space<vmem>>, %arg10: memref<16x128xf32, #tpu.memory_space<vmem>>, %arg11: memref<16x128xf32, #tpu.memory_space<vmem>>, %arg12: memref<128x16xbf16, #tpu.memory_space<vmem>>, %arg13: memref<16x128xbf16, #tpu.memory_space<vmem>>) attributes {dimension_semantics = [#tpu.dimension_semantics<arbitrary>, #tpu.dimension_semantics<arbitrary>], iteration_bounds = array<i64: 3, 1>, scalar_prefetch = 0 : i64, scratch_operands = 3 : i64, tpu.core_type = #tpu.core_type<tc>, window_params = [{pipeline_mode = #tpu.pipeline_mode<synchronous>, transform_indices = @transform_0, window_bounds = array<i64: 16, 128>}, {transform_indices = @transform_1, window_bounds = array<i64: 128, 128>}, {transform_indices = @transform_2, window_bounds = array<i64: 128, 1>}, {transform_indices = @transform_3, window_bounds = array<i64: 1, 128>}, {transform_indices = @transform_4, window_bounds = array<i64: 1, 128, 128>}, {transform_indices = @transform_5, window_bounds = array<i64: 1, 1, 128>}, {transform_indices = @transform_6, window_bounds = array<i64: 1, 128, 128>}, {transform_indices = @transform_7, window_bounds = array<i64: 1, 1, 128>}, {pipeline_mode = #tpu.pipeline_mode<synchronous>, transform_indices = @transform_8, window_bounds = array<i64: 16, 128>}]} {
    %c0_i32 = arith.constant 0 : i32
    %0 = arith.cmpi eq, %arg0, %c0_i32 : i32
    %c0_i32_0 = arith.constant 0 : i32
    %1 = arith.cmpi eq, %arg1, %c0_i32_0 : i32
    %2 = arith.andi %0, %1 : i1
    %3 = arith.extui %2 : i1 to i32
    %c0_i32_1 = arith.constant 0 : i32
    %4 = arith.cmpi ne, %3, %c0_i32_1 : i32
    scf.if %4 {
      %c0_22 = arith.constant 0 : index
      %c0_23 = arith.constant 0 : index
      %31 = vector.load %arg2[%c0_22, %c0_23] : memref<16x128xf32, #tpu.memory_space<vmem>>, vector<16x128xf32>
      %c0_24 = arith.constant 0 : index
      %c0_25 = arith.constant 0 : index
      %32 = vector.load %arg10[%c0_24, %c0_25] : memref<16x128xf32, #tpu.memory_space<vmem>>, vector<16x128xf32>
      tpu.vector_store %arg10[%c0_24, %c0_25], %31 {strides = array<i32>} : memref<16x128xf32, #tpu.memory_space<vmem>>, vector<16x128xf32>,
    } else {
    }
    %c0_i32_2 = arith.constant 0 : i32
    %5 = arith.cmpi eq, %arg1, %c0_i32_2 : i32
    %6 = arith.extui %5 : i1 to i32
    %c0_i32_3 = arith.constant 0 : i32
    %7 = arith.cmpi ne, %6, %c0_i32_3 : i32
    scf.if %7 {
      %cst_22 = arith.constant 0.000000e+00 : f32
      %31 = vector.broadcast %cst_22 : f32 to vector<16x128xf32>
      %c0_23 = arith.constant 0 : index
      %c0_24 = arith.constant 0 : index
      %32 = vector.load %arg11[%c0_23, %c0_24] : memref<16x128xf32, #tpu.memory_space<vmem>>, vector<16x128xf32>
      tpu.vector_store %arg11[%c0_23, %c0_24], %31 {strides = array<i32>} : memref<16x128xf32, #tpu.memory_space<vmem>>, vector<16x128xf32>,
    } else {
    }
    %c0 = arith.constant 0 : index
    %c0_4 = arith.constant 0 : index
    %8 = vector.load %arg10[%c0, %c0_4] : memref<16x128xf32, #tpu.memory_space<vmem>>, vector<16x128xf32>
    %9 = arith.truncf %8 : vector<16x128xf32> to vector<16x128xbf16>
    %c0_i32_5 = arith.constant 0 : i32
    %10 = arith.cmpi eq, %arg0, %c0_i32_5 : i32
    %c0_i32_6 = arith.constant 0 : i32
    %11 = arith.cmpi eq, %arg1, %c0_i32_6 : i32
    %12 = arith.andi %10, %11 : i1
    %13 = arith.extui %12 : i1 to i32
    %c0_i32_7 = arith.constant 0 : i32
    %14 = arith.cmpi ne, %13, %c0_i32_7 : i32
    scf.if %14 {
      %c0_22 = arith.constant 0 : index
      %c0_23 = arith.constant 0 : index
      %31 = vector.load %arg4[%c0_22, %c0_23] : memref<128x1xi32, #tpu.memory_space<vmem>>, vector<128x1xi32>
      %c0_24 = arith.constant 0 : index
      %c0_25 = arith.constant 0 : index
      %32 = vector.load %arg5[%c0_24, %c0_25] : memref<1x128xi32, #tpu.memory_space<vmem>>, vector<1x128xi32>
      %33 = tpu.iota {dimensions = array<i32: 1>} : vector<128x16xi32>
      %34 = vector.broadcast %31 : vector<128x1xi32> to vector<128x16xi32>
      %35 = arith.cmpi eq, %33, %34 : vector<128x16xi32>
      %36 = arith.extui %35 : vector<128x16xi1> to vector<128x16xi32>
      %37 = arith.sitofp %36 : vector<128x16xi32> to vector<128x16xf32>
      %38 = arith.truncf %37 : vector<128x16xf32> to vector<128x16xbf16>
      %39 = tpu.iota {dimensions = array<i32: 0>} : vector<16x128xi32>
      %40 = vector.broadcast %32 : vector<1x128xi32> to vector<16x128xi32>
      %41 = arith.cmpi eq, %39, %40 : vector<16x128xi32>
      %42 = arith.extui %41 : vector<16x128xi1> to vector<16x128xi32>
      %43 = arith.sitofp %42 : vector<16x128xi32> to vector<16x128xf32>
      %44 = arith.truncf %43 : vector<16x128xf32> to vector<16x128xbf16>
      %c0_26 = arith.constant 0 : index
      %c0_27 = arith.constant 0 : index
      %45 = vector.load %arg12[%c0_26, %c0_27] : memref<128x16xbf16, #tpu.memory_space<vmem>>, vector<128x16xbf16>
      tpu.vector_store %arg12[%c0_26, %c0_27], %38 {strides = array<i32>} : memref<128x16xbf16, #tpu.memory_space<vmem>>, vector<128x16xbf16>,
      %c0_28 = arith.constant 0 : index
      %c0_29 = arith.constant 0 : index
      %46 = vector.load %arg13[%c0_28, %c0_29] : memref<16x128xbf16, #tpu.memory_space<vmem>>, vector<16x128xbf16>
      tpu.vector_store %arg13[%c0_28, %c0_29], %44 {strides = array<i32>} : memref<16x128xbf16, #tpu.memory_space<vmem>>, vector<16x128xbf16>,
    } else {
    }
    %c0_8 = arith.constant 0 : index
    %c0_9 = arith.constant 0 : index
    %15 = vector.load %arg12[%c0_8, %c0_9] : memref<128x16xbf16, #tpu.memory_space<vmem>>, vector<128x16xbf16>
    %c0_10 = arith.constant 0 : index
    %c0_11 = arith.constant 0 : index
    %16 = vector.load %arg13[%c0_10, %c0_11] : memref<16x128xbf16, #tpu.memory_space<vmem>>, vector<16x128xbf16>
    %cst = arith.constant dense<0.000000e+00> : vector<128x128xf32>
    %17 = tpu.matmul %15, %9, %cst {dimension_numbers = #tpu.dot_dimension_numbers<[1], [0], [0], [1], [0, 0, 1, 1], [], []>} : vector<128x16xbf16>, vector<16x128xbf16>, vector<128x128xf32> -> vector<128x128xf32>
    %c0_12 = arith.constant 0 : index
    %c0_13 = arith.constant 0 : index
    %18 = vector.load %arg3[%c0_12, %c0_13] : memref<128x128xbf16, #tpu.memory_space<vmem>>, vector<128x128xbf16>
    %19 = arith.extf %18 : vector<128x128xbf16> to vector<128x128xf32>
    %20 = arith.addf %17, %19 : vector<128x128xf32>
    %cst_14 = arith.constant 0.000000e+00 : f32
    %21 = vector.broadcast %cst_14 : f32 to vector<128x128xf32>
    %22 = arith.maximumf %20, %21 : vector<128x128xf32>
    %c0_15 = arith.constant 0 : index
    %c0_16 = arith.constant 0 : index
    %23 = vector.load %arg11[%c0_15, %c0_16] : memref<16x128xf32, #tpu.memory_space<vmem>>, vector<16x128xf32>
    %24 = arith.truncf %22 : vector<128x128xf32> to vector<128x128xbf16>
    %cst_17 = arith.constant dense<0.000000e+00> : vector<16x128xf32>
    %25 = tpu.matmul %16, %24, %cst_17 {dimension_numbers = #tpu.dot_dimension_numbers<[1], [0], [0], [1], [0, 0, 1, 1], [], []>} : vector<16x128xbf16>, vector<128x128xbf16>, vector<16x128xf32> -> vector<16x128xf32>
    %26 = arith.addf %23, %25 : vector<16x128xf32>
    %c0_18 = arith.constant 0 : index
    %c0_19 = arith.constant 0 : index
    %27 = vector.load %arg11[%c0_18, %c0_19] : memref<16x128xf32, #tpu.memory_space<vmem>>, vector<16x128xf32>
    tpu.vector_store %arg11[%c0_18, %c0_19], %26 {strides = array<i32>} : memref<16x128xf32, #tpu.memory_space<vmem>>, vector<16x128xf32>,
    %c0_i32_20 = arith.constant 0 : i32
    %28 = arith.cmpi eq, %arg1, %c0_i32_20 : i32
    %29 = arith.extui %28 : i1 to i32
    %c0_i32_21 = arith.constant 0 : i32
    %30 = arith.cmpi ne, %29, %c0_i32_21 : i32
    scf.if %30 {
      %c0_22 = arith.constant 0 : index
      %c0_23 = arith.constant 0 : index
      %31 = vector.load %arg11[%c0_22, %c0_23] : memref<16x128xf32, #tpu.memory_space<vmem>>, vector<16x128xf32>
      %cst_24 = arith.constant 1.000000e+00 : f32
      %32 = vector.broadcast %cst_24 : f32 to vector<16x128xf32>
      %33 = arith.mulf %32, %8 : vector<16x128xf32>
      %34 = arith.addf %31, %33 : vector<16x128xf32>
      %35 = arith.truncf %34 : vector<16x128xf32> to vector<16x128xbf16>
      %c0_25 = arith.constant 0 : index
      %c0_26 = arith.constant 0 : index
      %c0_27 = arith.constant 0 : index
      %36 = vector.load %arg6[%c0_25, %c0_26, %c0_27] : memref<1x128x128xbf16, #tpu.memory_space<vmem>>, vector<1x128x128xbf16>
      %37 = vector.shape_cast %36 : vector<1x128x128xbf16> to vector<128x128xbf16>
      %cst_28 = arith.constant dense<0.000000e+00> : vector<16x128xf32>
      %38 = tpu.matmul %35, %37, %cst_28 {dimension_numbers = #tpu.dot_dimension_numbers<[1], [0], [0], [1], [0, 0, 1, 1], [], []>} : vector<16x128xbf16>, vector<128x128xbf16>, vector<16x128xf32> -> vector<16x128xf32>
      %c0_29 = arith.constant 0 : index
      %c0_30 = arith.constant 0 : index
      %c0_31 = arith.constant 0 : index
      %39 = vector.load %arg7[%c0_29, %c0_30, %c0_31] : memref<1x1x128xf32, #tpu.memory_space<vmem>>, vector<1x1x128xf32>
      %40 = vector.shape_cast %39 : vector<1x1x128xf32> to vector<1x128xf32>
      %41 = vector.broadcast %40 : vector<1x128xf32> to vector<16x128xf32>
      %42 = arith.addf %38, %41 : vector<16x128xf32>
      %cst_32 = arith.constant 0.000000e+00 : f32
      %43 = vector.broadcast %cst_32 : f32 to vector<16x128xf32>
      %44 = arith.maximumf %42, %43 : vector<16x128xf32>
      %45 = arith.truncf %44 : vector<16x128xf32> to vector<16x128xbf16>
      %c0_33 = arith.constant 0 : index
      %c0_34 = arith.constant 0 : index
      %c0_35 = arith.constant 0 : index
      %46 = vector.load %arg8[%c0_33, %c0_34, %c0_35] : memref<1x128x128xbf16, #tpu.memory_space<vmem>>, vector<1x128x128xbf16>
      %47 = vector.shape_cast %46 : vector<1x128x128xbf16> to vector<128x128xbf16>
      %cst_36 = arith.constant dense<0.000000e+00> : vector<16x128xf32>
      %48 = tpu.matmul %45, %47, %cst_36 {dimension_numbers = #tpu.dot_dimension_numbers<[1], [0], [0], [1], [0, 0, 1, 1], [], []>} : vector<16x128xbf16>, vector<128x128xbf16>, vector<16x128xf32> -> vector<16x128xf32>
      %c0_37 = arith.constant 0 : index
      %c0_38 = arith.constant 0 : index
      %c0_39 = arith.constant 0 : index
      %49 = vector.load %arg9[%c0_37, %c0_38, %c0_39] : memref<1x1x128xf32, #tpu.memory_space<vmem>>, vector<1x1x128xf32>
      %50 = vector.shape_cast %49 : vector<1x1x128xf32> to vector<1x128xf32>
      %51 = vector.broadcast %50 : vector<1x128xf32> to vector<16x128xf32>
      %52 = arith.addf %48, %51 : vector<16x128xf32>
      %c2_i32 = arith.constant 2 : i32
      %53 = arith.subi %c2_i32, %arg0 : i32
      %54 = vector.broadcast %53 : i32 to vector<16x128xi32>
      %c0_i32_40 = arith.constant 0 : i32
      %55 = vector.broadcast %c0_i32_40 : i32 to vector<16x128xi32>
      %56 = arith.cmpi sgt, %54, %55 : vector<16x128xi32>
      %cst_41 = arith.constant 0.000000e+00 : f32
      %57 = vector.broadcast %cst_41 : f32 to vector<16x128xf32>
      %58 = arith.maximumf %52, %57 : vector<16x128xf32>
      %59 = arith.select %56, %58, %52 : vector<16x128xi1>, vector<16x128xf32>
      %60 = arith.addf %59, %8 : vector<16x128xf32>
      %61 = tpu.iota {dimensions = array<i32: 0>} : vector<16x128xi32>
      %c16_i32 = arith.constant 16 : i32
      %62 = vector.broadcast %c16_i32 : i32 to vector<16x128xi32>
      %63 = arith.cmpi slt, %61, %62 : vector<16x128xi32>
      %cst_42 = arith.constant 0.000000e+00 : f32
      %64 = vector.broadcast %cst_42 : f32 to vector<16x128xf32>
      %65 = arith.select %63, %60, %64 : vector<16x128xi1>, vector<16x128xf32>
      %c0_43 = arith.constant 0 : index
      %c0_44 = arith.constant 0 : index
      %66 = vector.load %arg10[%c0_43, %c0_44] : memref<16x128xf32, #tpu.memory_space<vmem>>, vector<16x128xf32>
      tpu.vector_store %arg10[%c0_43, %c0_44], %65 {strides = array<i32>} : memref<16x128xf32, #tpu.memory_space<vmem>>, vector<16x128xf32>,
    } else {
    }
    return
  }
  func.func @transform_0(%arg0: i32, %arg1: i32) -> (i32, i32) {
    %c0_i32 = arith.constant 0 : i32
    %c0_i32_0 = arith.constant 0 : i32
    %c0_i32_1 = arith.constant 0 : i32
    return %c0_i32, %c0_i32_0 : i32, i32
  }
  func.func @transform_1(%arg0: i32, %arg1: i32) -> (i32, i32) {
    %c0_i32 = arith.constant 0 : i32
    %c0_i32_0 = arith.constant 0 : i32
    return %arg1, %c0_i32 : i32, i32
  }
  func.func @transform_2(%arg0: i32, %arg1: i32) -> (i32, i32) {
    %c0_i32 = arith.constant 0 : i32
    %c0_i32_0 = arith.constant 0 : i32
    return %arg1, %c0_i32 : i32, i32
  }
  func.func @transform_3(%arg0: i32, %arg1: i32) -> (i32, i32) {
    %c0_i32 = arith.constant 0 : i32
    %c0_i32_0 = arith.constant 0 : i32
    return %c0_i32, %arg1 : i32, i32
  }
  func.func @transform_4(%arg0: i32, %arg1: i32) -> (i32, i32, i32) {
    %c0_i32 = arith.constant 0 : i32
    %c0_i32_0 = arith.constant 0 : i32
    %c0_i32_1 = arith.constant 0 : i32
    return %arg0, %c0_i32, %c0_i32_0 : i32, i32, i32
  }
  func.func @transform_5(%arg0: i32, %arg1: i32) -> (i32, i32, i32) {
    %c0_i32 = arith.constant 0 : i32
    %c0_i32_0 = arith.constant 0 : i32
    %c0_i32_1 = arith.constant 0 : i32
    return %arg0, %c0_i32, %c0_i32_0 : i32, i32, i32
  }
  func.func @transform_6(%arg0: i32, %arg1: i32) -> (i32, i32, i32) {
    %c0_i32 = arith.constant 0 : i32
    %c0_i32_0 = arith.constant 0 : i32
    %c0_i32_1 = arith.constant 0 : i32
    return %arg0, %c0_i32, %c0_i32_0 : i32, i32, i32
  }
  func.func @transform_7(%arg0: i32, %arg1: i32) -> (i32, i32, i32) {
    %c0_i32 = arith.constant 0 : i32
    %c0_i32_0 = arith.constant 0 : i32
    %c0_i32_1 = arith.constant 0 : i32
    return %arg0, %c0_i32, %c0_i32_0 : i32, i32, i32
  }
  func.func @transform_8(%arg0: i32, %arg1: i32) -> (i32, i32) {
    %c0_i32 = arith.constant 0 : i32
    %c0_i32_0 = arith.constant 0 : i32
    %c0_i32_1 = arith.constant 0 : i32
    return %c0_i32, %c0_i32_0 : i32, i32
  }
}

</mosaic_0001>

<bundles_post_ra>
// kernel: tpu_custom_call.1
= control target key start
LH: loop header
LB: loop body
LE: loop exit
PB: predicated region body
PF: predicated region fallthrough
CT: control target
= control target key end

     0   :  { %s2019_s0 = inlined_call_operand.vmem [shape: f32[16,128], index: 0, kind: input, shape index: {}]   ;;  %s2020_s1 = inlined_call_operand.vmem [shape: bf16[128,128], index: 1, kind: input, shape index: {}]   ;;  %s2021_s2 = inlined_call_operand.vmem [shape: s32[128,1], index: 2, kind: input, shape index: {}]   ;;  %s2022_s3 = inlined_call_operand.vmem [shape: s32[1,128], index: 3, kind: input, shape index: {}]   ;;  %s2023_s4 = inlined_call_operand.hbm [shape: bf16[3,128,128], index: 4, kind: input, shape index: {}]   ;;  %s2024_s5 = inlined_call_operand.vmem [shape: f32[3,1,128], index: 5, kind: input, shape index: {}]   ;;  %s2025_s6 = inlined_call_operand.hbm [shape: bf16[3,128,128], index: 6, kind: input, shape index: {}]   ;;  %s2026_s7 = inlined_call_operand.vmem [shape: f32[3,1,128], index: 7, kind: input, shape index: {}]   ;;  %s2027_s8 = inlined_call_operand.hbm [shape: f32[16,128], index: 8, kind: output, shape index: {}]  }
   0x1   :  { %2032 = sst [smem:[#allocation18_spill]] %s2023_s4 }
   0x2   :  { %13 = vsyncpa [#allocation6], 0 }
   0x3   :  { %15 = vsyncpa [#allocation6 + $0x1], 0 }
   0x4   :  { %16 = vsyncpa [#allocation9], 0 }
   0x5   :  { %18 = vsyncpa [#allocation9 + $0x1], 0 }
   0x6   :  { %19 = vsyncpa [#allocation7], 0  ;;  %s1696_s27 = smov 0   ;;  %s1698_s28 = smov 0  }
   0x7   :  { %s1700_s29 = smov 0   ;;  %s1702_s30 = smov 0  }
   0x8   :  { %s1704_s9 = smov 0   ;;  %s1706_s10 = smov 0  }
   0x9 LB: > { %2033 = sst [smem:[#allocation14_spill]] %s1629_s29  ;;  %s2028_s11 = sadd.s32 4294967295, %s1641_s10   ;;  %s1641_s10 = sphi %s1706_s10, %s25_s10   ;;  %s1637_s9 = sphi %s1704_s9, %s2045_s9   ;;  %s1633_s30 = sphi %s1702_s30, %s2044_s30   ;;  %s1629_s29 = sphi %s1700_s29, %s2043_s29   ;;  %s1625_s28 = sphi %s1698_s28, %s2047_s28   ;;  %s1621_s27 = sphi %s1696_s27, %s2046_s27  }
   0xa   : > { %2034 = sst [smem:[#allocation15_spill]] %s1637_s9  ;;  %s37_s12 = sadd.s32 1, %s1637_s9 }
   0xb   : > { %p39_p0 = scmp.ge.s32.totalorder %s37_s12, 3  ;;  %s143_s13 = sadd.s32 1, %s1629_s29 }
   0xc   : > { %p150_p1 = scmp.ne.s32.totalorder %s1629_s29, %s1625_s28  ;;  %p151_p2 = scmp.eq.s32.totalorder %s1641_s10, 0 }
   0xd   : > { %s2049_s12 = smov (%p39_p0, %s37_s12), 0  ;;  %p156_p4 = scmp.ne.s32.totalorder %s1625_s28, %s1621_s27 }
   0xe   : > { %2035 = sst [smem:[#allocation16_spill]] %s2049_s12  ;;  %p1732_p3 = por %p151_p2, %p150_p1 }
   0xf   : > { %s140_s15 = ssub.s32 %s1637_s9, %s2049_s12  ;;  %p157_p5 = scmp.eq.s32.totalorder %s2028_s11, 0 }
  0x10   : > { %p141_p6 = scmp.eq.s32.totalorder %s140_s15, 0  ;;  %p1430_p8 = scmp.lt.s32.totalorder %s1641_s10, 3 }
  0x11   : > { %p1741_p7 = por %p157_p5, %p156_p4  ;;  %s1750_s18 = sand.u32 1, %s1629_s29  }
  0x12   : > { %s1747_s17 = scalar_select %p141_p6, %s1629_s29, %s143_s13  }
  0x13   : > { %s1343_s19 = sshll.u32 %s1637_s9, 6  ;;  %s1203_s20 = sshll.u32 %s1750_s18, 6 }
  0x14   : > { %2038 = sst [smem:[#allocation17_spill]] %s1747_s17  ;;  %s310_s25 = scalar_lea.vmem [#allocation5], %s1203_s20 }
  0x15   : > { %s2039_s4 = sld [smem:[#allocation18_spill]]  ;;  %s318_s26 = sshll.u32 %s310_s25, 4  ;;  %s319_s26 = int_to_ptr.vmem [resolvable:$true] %s318_s26 }
  0x16   : > { %p1759_p9 = pnand %p1430_p8, %p1732_p3  ;;  %p1209_p10 = scmp.ge.s32.totalorder %s1641_s10, 1 }
  0x17   : > { %p360_p11 = scmp.lt.s32.totalorder %s1641_s10, 4  ;;  %s307_s13 = scalar_lea.sflag [#allocation6], %s1750_s18 }
  0x18   : > { %s1643_s15 = smov 64   ;;  %s1644_s11 = smov 4  }
  0x19   : > { %p361_p12 = pnand %p1209_p10, %p360_p11  ;;  %s338_s14 = scalar_lea.vmem [#allocation8], %s1203_s20 }
  0x1a   : > { %s335_s12 = scalar_lea.sflag [#allocation9], %s1750_s18  ;;  %s366_s9 = sand.u32 (!%p361_p12), 1, %s1625_s28  }
  0x1b   : > { %s315_s23 = scalar_lea.hbm %s2039_s4, %s1343_s19  ;;  %s346_s4 = sshll.u32 %s338_s14, 4  ;;  %s347_s4 = int_to_ptr.vmem [resolvable:$true] %s346_s4 }
  0x1c   : > { %s316_s24 = sshll.u32 %s315_s23, 4  ;;  %s343_s23 = scalar_lea.hbm %s2025_s6, %s1343_s19  ;;  %s317_s24 = int_to_ptr.hbm [resolvable:$true] %s316_s24 }
  0x1d   : > { %1426 = dma.hbm_to_vmem [thread:$0]  (!%p1759_p9), %s317_s24, 1024, %s319_s26, %s307_s13, %s1643_s15, %s1643_s15, %s1644_s11  }
  0x1e   : > { %s344_s25 = sshll.u32 %s343_s23, 4  ;;  %364 = sbr.rel (%p361_p12) target bundleno = 852 (0x354), region = 52  ;;  %s345_s25 = int_to_ptr.hbm [resolvable:$true] %s344_s25 }
  0x1f   : > { %1429 = dma.hbm_to_vmem [thread:$0]  (!%p1759_p9), %s345_s25, 1024, %s347_s4, %s335_s12, %s1643_s15, %s1643_s15, %s1644_s11  }
  0x20   : > { %s1210_s17 = sshll.u32 (!%p361_p12), %s366_s9, 6  ;;  %s367_s29 = scalar_lea.sflag (!%p361_p12), [#allocation6], %s366_s9 }
  0x21   : > { %s1775_s24 = scalar_lea.vmem (!%p361_p12), [#allocation5], %s1210_s17 }
  0x23   : > { %1608 = dma.done.wait (%p1741_p7), %s367_s29, 1024  }
  0x24   : > { %1610 = vsyncadd (%p1741_p7), %s367_s29, 4294966272  ;;  %s377_s19 = scalar_lea.sflag [#allocation9], %s366_s9  ;;  %s1781_s20 = scalar_lea.vmem [#allocation8], %s1210_s17 }
  0x25   : > { %1612 = dma.done.wait (%p1741_p7), %s377_s19, 1024  }
  0x26   : > { %1614 = vsyncadd (%p1741_p7), %s377_s19, 4294966272  ;;  %p448_p13 = scmp.lt.s32.totalorder %s1633_s30, 2  ;;  %p455_p0 = scmp.eq.s32.totalorder %s1633_s30, 0 }
  0x27   : > { %v461_v0 = vld [vmem:[%s2019_s0] sm:$0xff] (%p455_p0)  ;;  %v462_v1 = vld [vmem:[%s2019_s0 + $0x8] sm:$0xff] (%p455_p0) }
  0x28   : > { %s1790_s4 = scalar_select %p448_p13, %s1633_s30, 2  ;;  %463 = vst [vmem:[#allocation10] sm:$0xff] (%p455_p0), %v461_v0 }
  0x29   : > { %460 = sbr.rel (!%p455_p0) target bundleno = 46 (0x2e), region = 64  ;;  %464 = vst [vmem:[#allocation10 + $0x8] sm:$0xff] (%p455_p0), %v462_v1 }
  0x2a   : > { %s450_s29 = scalar_lea.vmem %s2024_s5, %s1790_s4  ;;  %s453_s18 = scalar_lea.vmem %s2026_s7, %s1790_s4 }
  0x2e PF: > { %v1645_v4 = vmov 0.0   ;;  %474 = sbr.rel (!%p455_p0) target bundleno = 209 (0xd1), region = 72  ;;  %v479_v6 = vld [vmem:[%s2021_s2 + $0x20] sm:$0xff] (%p455_p0)  ;;  %v477_v7 = vld [vmem:[%s2021_s2 + $0x10] sm:$0xff] (%p455_p0)  ;;  %v1646_v9 = vmov (%p455_p0), 0   ;;  %v480_v10 = vld [vmem:[%s2021_s2 + $0x28] sm:$0xff] (%p455_p0)  ;;  %v492_v13 = vlaneseq (%p455_p0) }
  0x2f   : > { %v1808_v2 = vld [vmem:[#allocation10] sm:$0xff]  ;;  %468 = vst [vmem:[#allocation2] sm:$0xff] %v1645_v4  ;;  %v475_v8 = vld [vmem:[%s2021_s2] sm:$0xff] (%p455_p0)  ;;  %1491 = vset.pattern.permute.xlu2 (%p455_p0), %v1646_v9  ;;  %1490 = vset.pattern.permute.xlu1 (%p455_p0), %v1646_v9  ;;  %v476_v12 = vld [vmem:[%s2021_s2 + $0x8] sm:$0xff] (%p455_p0)  ;;  %v1647_v20 = vmov (%p455_p0), 0.0   ;;  %vm618_vm3 = vcmask (%p455_p0), 125952  }
  0x30   : > { %v1810_v3 = vld [vmem:[#allocation10 + $0x8] sm:$0xff]  ;;  %469 = vst [vmem:[#allocation2 + $0x8] sm:$0xff] %v1645_v4  ;;  %1489 = vset.pattern.permute.xlu0 (%p455_p0), %v1646_v9  ;;  %507 = vperm.xlu2 (%p455_p0), %1491, %v479_v6   ;;  %v478_v11 = vld [vmem:[%s2021_s2 + $0x18] sm:$0xff] (%p455_p0)  ;;  %v607_v15 = vshrl.u32 (%p455_p0), %v492_v13, 7  ;;  %v481_v19 = vld [vmem:[%s2021_s2 + $0x30] sm:$0xff] (%p455_p0)  ;;  %v1871_v31 = vand.u32 (%p455_p0), 127, %v492_v13 }
  0x31   : > { %v1814_v5 = vpack.c.bf16 %v1810_v3, %v1808_v2  ;;  %501 = vperm.xlu1 (%p455_p0), %1490, %v477_v7   ;;  %495 = vperm.xlu0 (%p455_p0), %1489, %v475_v8   ;;  %v1492_v14 = vld [vmem:[%s2022_s3] ss:$0 sm:$0xff] (%p455_p0)  ;;  %v482_v18 = vld [vmem:[%s2021_s2 + $0x38] sm:$0xff] (%p455_p0)  ;;  %v485_v25 = vld [vmem:[%s2021_s2 + $0x50] sm:$0xff] (%p455_p0) }
  0x32   : > { %v483_v16 = vld [vmem:[%s2021_s2 + $0x40] sm:$0xff] (%p455_p0)  ;;  %v608_v17 = vadd.s32 (%p455_p0), 8, %v607_v15  ;;  %vm610_vm0 = vcmp.eq.s32.totalorder (%p455_p0), %v607_v15, %v1492_v14  ;;  %v486_v24 = vld [vmem:[%s2021_s2 + $0x58] sm:$0xff] (%p455_p0)  ;;  %v484_v26 = vld [vmem:[%s2021_s2 + $0x48] sm:$0xff] (%p455_p0) }
  0x33   : > { %v1229_v21 = vsel %vm610_vm0, 1.0, %v1647_v20  ;;  %v489_v27 = vld [vmem:[%s2021_s2 + $0x70] sm:$0xff]  ;;  %v488_v28 = vld [vmem:[%s2021_s2 + $0x68] sm:$0xff]  ;;  %v487_v29 = vld [vmem:[%s2021_s2 + $0x60] sm:$0xff] }
  0x34   : > { %vm611_vm1 = vcmp.eq.s32.totalorder %v608_v17, %v1492_v14  ;;  %v490_v30 = vld [vmem:[%s2021_s2 + $0x78] sm:$0xff] }
  0x35   : > { %v1230_v22 = vsel %vm611_vm1, 1.0, %v1647_v20 }
  0x36   : > { %v1372_v23 = vpack.c.bf16 %v1230_v22, %v1229_v21 }
  0x38   : > { %510 = vperm.xlu2 %1491, %v480_v10   ;;  %1373 = vst [vmem:[#allocation4] sm:$0xff] %v1372_v23  }
  0x39   : > { %504 = vperm.xlu1 %1490, %v478_v11   ;;  %498 = vperm.xlu0 %1489, %v476_v12  }
  0x40   : > { %519 = vperm.xlu2 %1491, %v483_v16  }
  0x41   : > { %516 = vperm.xlu1 %1490, %v482_v18   ;;  %513 = vperm.xlu0 %1489, %v481_v19  }
  0x48   : > { %528 = vperm.xlu2 %1491, %v486_v24  }
  0x49   : > { %525 = vperm.xlu1 %1490, %v485_v25   ;;  %522 = vperm.xlu0 %1489, %v484_v26  }
  0x50   : > { %537 = vperm.xlu2 %1491, %v489_v27  }
  0x51   : > { %534 = vperm.xlu1 %1490, %v488_v28   ;;  %531 = vperm.xlu0 %1489, %v487_v29  }
  0x59   : > { %540 = vperm.xlu0 %1489, %v490_v30  }
  0x8a   : > { %v508_v32 = vpop.permute.xlu2 %507 }
  0x8b   : > { %vm546_vm2 = vcmp.eq.s32.totalorder %v1871_v31, %v508_v32 }
  0x8c   : > { %v1217_v33 = vsel %vm546_vm2, 1.0, %v1647_v20 }
  0x8d   : > { %v594_v34 = vpack.c.bf16 %v1217_v33, %v1217_v33 }
  0x8f   : > { %623 = vst.msk [vmem:[#allocation3 + $0x10] sm:$0xf] %vm618_vm3, %v594_v34 }
  0x92   : > { %v511_v35 = vpop.permute.xlu2 %510 }
  0x93   : > { %vm547_vm4 = vcmp.eq.s32.totalorder %v1871_v31, %v511_v35 }
  0x94   : > { %v1218_v36 = vsel %vm547_vm4, 1.0, %v1647_v20 }
  0x95   : > { %v595_v37 = vpack.c.bf16 %v1218_v36, %v1218_v36 }
  0x97   : > { %624 = vst.msk [vmem:[#allocation3 + $0x14] sm:$0xf] %vm618_vm3, %v595_v37 }
  0x9a   : > { %v520_v38 = vpop.permute.xlu2 %519 }
  0x9b   : > { %vm550_vm5 = vcmp.eq.s32.totalorder %v1871_v31, %v520_v38 }
  0x9c   : > { %v1221_v39 = vsel %vm550_vm5, 1.0, %v1647_v20 }
  0x9d   : > { %v598_v40 = vpack.c.bf16 %v1221_v39, %v1221_v39 }
  0x9f   : > { %627 = vst.msk [vmem:[#allocation3 + $0x20] sm:$0xf] %vm618_vm3, %v598_v40 }
  0xa2   : > { %v529_v41 = vpop.permute.xlu2 %528 }
  0xa3   : > { %vm553_vm6 = vcmp.eq.s32.totalorder %v1871_v31, %v529_v41  ;;  %v502_v42 = vpop.permute.xlu1 %501  ;;  %v496_v43 = vpop.permute.xlu0 %495 }
  0xa4   : > { %v1224_v44 = vsel %vm553_vm6, 1.0, %v1647_v20  ;;  %vm544_vm7 = vcmp.eq.s32.totalorder %v1871_v31, %v502_v42  ;;  %vm542_vm8 = vcmp.eq.s32.totalorder %v1871_v31, %v496_v43 }
  0xa5   : > { %v601_v45 = vpack.c.bf16 %v1224_v44, %v1224_v44  ;;  %v1215_v46 = vsel %vm544_vm7, 1.0, %v1647_v20  ;;  %v1213_v47 = vsel %vm542_vm8, 1.0, %v1647_v20 }
  0xa6   : > { %v592_v48 = vpack.c.bf16 %v1215_v46, %v1215_v46  ;;  %v590_v49 = vpack.c.bf16 %v1213_v47, %v1213_v47 }
  0xa7   : > { %630 = vst.msk [vmem:[#allocation3 + $0x2c] sm:$0xf] %vm618_vm3, %v601_v45 }
  0xa8   : > { %621 = vst.msk [vmem:[#allocation3 + $0x8] sm:$0xf] %vm618_vm3, %v592_v48 }
  0xa9   : > { %619 = vst.msk [vmem:[#allocation3] sm:$0xf] %vm618_vm3, %v590_v49 }
  0xaa   : > { %v538_v50 = vpop.permute.xlu2 %537 }
  0xab   : > { %vm556_vm9 = vcmp.eq.s32.totalorder %v1871_v31, %v538_v50  ;;  %v505_v51 = vpop.permute.xlu1 %504  ;;  %v499_v52 = vpop.permute.xlu0 %498 }
  0xac   : > { %v1227_v53 = vsel %vm556_vm9, 1.0, %v1647_v20  ;;  %vm545_vm10 = vcmp.eq.s32.totalorder %v1871_v31, %v505_v51  ;;  %vm543_vm11 = vcmp.eq.s32.totalorder %v1871_v31, %v499_v52 }
  0xad   : > { %v604_v54 = vpack.c.bf16 %v1227_v53, %v1227_v53  ;;  %v1216_v55 = vsel %vm545_vm10, 1.0, %v1647_v20  ;;  %v1214_v56 = vsel %vm543_vm11, 1.0, %v1647_v20 }
  0xae   : > { %v593_v57 = vpack.c.bf16 %v1216_v55, %v1216_v55  ;;  %v591_v58 = vpack.c.bf16 %v1214_v56, %v1214_v56 }
  0xaf   : > { %633 = vst.msk [vmem:[#allocation3 + $0x38] sm:$0xf] %vm618_vm3, %v604_v54 }
  0xb0   : > { %622 = vst.msk [vmem:[#allocation3 + $0xc] sm:$0xf] %vm618_vm3, %v593_v57 }
  0xb1   : > { %620 = vst.msk [vmem:[#allocation3 + $0x4] sm:$0xf] %vm618_vm3, %v591_v58 }
  0xb3   : > { %v517_v59 = vpop.permute.xlu1 %516  ;;  %v514_v60 = vpop.permute.xlu0 %513 }
  0xb4   : > { %vm549_vm12 = vcmp.eq.s32.totalorder %v1871_v31, %v517_v59  ;;  %vm548_vm13 = vcmp.eq.s32.totalorder %v1871_v31, %v514_v60 }
  0xb5   : > { %v1220_v61 = vsel %vm549_vm12, 1.0, %v1647_v20  ;;  %v1219_v62 = vsel %vm548_vm13, 1.0, %v1647_v20 }
  0xb6   : > { %v597_v63 = vpack.c.bf16 %v1220_v61, %v1220_v61  ;;  %v596_v0 = vpack.c.bf16 %v1219_v62, %v1219_v62 }
  0xb8   : > { %626 = vst.msk [vmem:[#allocation3 + $0x1c] sm:$0xf] %vm618_vm3, %v597_v63 }
  0xb9   : > { %625 = vst.msk [vmem:[#allocation3 + $0x18] sm:$0xf] %vm618_vm3, %v596_v0 }
  0xbb   : > { %v526_v1 = vpop.permute.xlu1 %525  ;;  %v523_v4 = vpop.permute.xlu0 %522 }
  0xbc   : > { %vm552_vm14 = vcmp.eq.s32.totalorder %v1871_v31, %v526_v1  ;;  %vm551_vm15 = vcmp.eq.s32.totalorder %v1871_v31, %v523_v4 }
  0xbd   : > { %v1223_v6 = vsel %vm552_vm14, 1.0, %v1647_v20  ;;  %v1222_v7 = vsel %vm551_vm15, 1.0, %v1647_v20 }
  0xbe   : > { %v600_v8 = vpack.c.bf16 %v1223_v6, %v1223_v6  ;;  %v599_v9 = vpack.c.bf16 %v1222_v7, %v1222_v7 }
  0xc0   : > { %629 = vst.msk [vmem:[#allocation3 + $0x28] sm:$0xf] %vm618_vm3, %v600_v8 }
  0xc1   : > { %628 = vst.msk [vmem:[#allocation3 + $0x24] sm:$0xf] %vm618_vm3, %v599_v9 }
  0xc3   : > { %v535_v10 = vpop.permute.xlu1 %534  ;;  %v532_v11 = vpop.permute.xlu0 %531 }
  0xc4   : > { %vm555_vm0 = vcmp.eq.s32.totalorder %v1871_v31, %v535_v10  ;;  %vm554_vm1 = vcmp.eq.s32.totalorder %v1871_v31, %v532_v11 }
  0xc5   : > { %v1226_v12 = vsel %vm555_vm0, 1.0, %v1647_v20  ;;  %v1225_v13 = vsel %vm554_vm1, 1.0, %v1647_v20 }
  0xc6   : > { %v603_v14 = vpack.c.bf16 %v1226_v12, %v1226_v12  ;;  %v602_v15 = vpack.c.bf16 %v1225_v13, %v1225_v13 }
  0xc8   : > { %632 = vst.msk [vmem:[#allocation3 + $0x34] sm:$0xf] %vm618_vm3, %v603_v14 }
  0xc9   : > { %631 = vst.msk [vmem:[#allocation3 + $0x30] sm:$0xf] %vm618_vm3, %v602_v15 }
  0xcb   : > { %v541_v16 = vpop.permute.xlu0 %540 }
  0xcc   : > { %vm557_vm2 = vcmp.eq.s32.totalorder %v1871_v31, %v541_v16 }
  0xcd   : > { %v1228_v17 = vsel %vm557_vm2, 1.0, %v1647_v20 }
  0xce   : > { %v605_v18 = vpack.c.bf16 %v1228_v17, %v1228_v17 }
  0xd0   : > { %634 = vst.msk [vmem:[#allocation3 + $0x3c] sm:$0xf] %vm618_vm3, %v605_v18 }
  0xd1 PF: > { %759 = vmatpush.bf16.msra.mxu0 %v1814_v5  ;;  %1414 = vmatpush.bf16.msra.mxu2 %v1814_v5  ;;  %v1346_v19 = vld [vmem:[#allocation3] sm:$0xff]  ;;  %vm727_vm4 = vcmask 130048   ;;  %v1352_v21 = vld [vmem:[#allocation3 + $0x30] sm:$0xff]  ;;  %v1347_v20 = vld [vmem:[#allocation3 + $0x8] sm:$0xff]  ;;  %s1026_s19 = ssub.s32 2, %s1633_s30  ;;  %s1051_s17 = sshll.u32 %s2027_s8, 4  ;;  %s1052_s17 = int_to_ptr.hbm [resolvable:$true] %s1051_s17 }
  0xd2   : > { %v1350_v22 = vld [vmem:[#allocation3 + $0x20] sm:$0xff]  ;;  %1413 = vmatpush.bf16.msra.mxu1 %v1814_v5  ;;  %v1351_v24 = vld [vmem:[#allocation3 + $0x28] sm:$0xff]  ;;  %v1348_v25 = vld [vmem:[#allocation3 + $0x10] sm:$0xff]  ;;  %s2041_s4 = sadd.s32 4294967295, %s1641_s10   ;;  %s1650_s16 = smov 8  }
  0xd3   : > { %v1349_v26 = vld [vmem:[#allocation3 + $0x18] sm:$0xff]  ;;  %v1412_v33 = vld [vmem:[%s2020_s1 + $0x38] sm:$0xff]   ;;  %v1411_v37 = vld [vmem:[%s2020_s1 + $0x30] sm:$0xff]   ;;  %p1431_p1 = scmp.eq.s32.totalorder %s2041_s4, 2 }
  0xd4   : > { %1263 = vmatmul.msk.bf16.vlgmr.msra.gmra.mxu0 %vm727_vm4, %v1346_v19  ;;  %1269 = vmatmul.msk.bf16.vlgmr.msra.gmra.mxu2 %vm727_vm4, %v1352_v21  ;;  %v1404_v36 = vunpack.c.l.bf16 %v1412_v33  ;;  %v1410_v39 = vld [vmem:[%s2020_s1 + $0x28] sm:$0xff]   ;;  %v1400_v40 = vunpack.c.l.bf16 %v1411_v37  ;;  %v1401_v41 = vunpack.c.h.bf16 %v1411_v37  ;;  %v1405_v43 = vunpack.c.h.bf16 %v1412_v33  ;;  %v1409_v49 = vld [vmem:[%s2020_s1 + $0x20] sm:$0xff]   ;;  %v1362_v10 = vld [vmem:[%s1775_s24 + $0x38] sm:$0xff] }
  0xd5   : > { %1267 = vmatmul.msk.bf16.vlgmr.msra.gmra.mxu1 %vm727_vm4, %v1350_v22  ;;  %v1396_v44 = vunpack.c.l.bf16 %v1410_v39  ;;  %v1397_v45 = vunpack.c.h.bf16 %v1410_v39  ;;  %v1392_v57 = vunpack.c.l.bf16 %v1409_v49  ;;  %v1393_v60 = vunpack.c.h.bf16 %v1409_v49  ;;  %v1408_v12 = vld [vmem:[%s2020_s1 + $0x18] sm:$0xff]   ;;  %927 = vmatpush.bf16.msrb.mxu2 %v1362_v10  ;;  %v1361_v14 = vld [vmem:[%s1775_s24 + $0x30] sm:$0xff]  ;;  %v1407_v16 = vld [vmem:[%s2020_s1 + $0x10] sm:$0xff]  }
  0xd6   : > { %v1388_v15 = vunpack.c.l.bf16 %v1408_v12  ;;  %v1385_v17 = vunpack.c.h.bf16 %v1407_v16  ;;  %v1389_v18 = vunpack.c.h.bf16 %v1408_v12  ;;  %v1384_v19 = vunpack.c.l.bf16 %v1407_v16  ;;  %v1406_v22 = vld [vmem:[%s2020_s1 + $0x8] sm:$0xff]   ;;  %v1359_v49 = vld [vmem:[%s1775_s24 + $0x20] sm:$0xff]  ;;  %v1493_v10 = vld [vmem:[%s450_s29] ss:$0 sm:$0xff] }
  0xd7   : > { %v1353_v23 = vld [vmem:[#allocation3 + $0x38] sm:$0xff] }
  0xd9   : > { %928 = vmatpush.bf16.msrb.mxu2 %v1361_v14 }
  0xe4   : > { %1264 = vmatmul.msk.bf16.gmra.mxu0 %vm727_vm4, %v1347_v20  ;;  %1270 = vmatmul.msk.bf16.gmra.mxu2 %vm727_vm4, %v1353_v23  ;;  %v1381_v23 = vunpack.c.h.bf16 %v1406_v22 }
  0xe5   : > { %1268 = vmatmul.msk.bf16.gmra.mxu1 %vm727_vm4, %v1351_v24 }
  0xf4   : > { %1265 = vmatmul.msk.bf16.gmra.mxu0 %vm727_vm4, %v1348_v25 }
 0x104   : > { %1266 = vmatmul.msk.bf16.gmra.mxu0 %vm727_vm4, %v1349_v26  ;;  %v1380_v26 = vunpack.c.l.bf16 %v1406_v22 }
 0x151   : > { %v1932_v5 = vpop.f32.mrf.mxu0 }
 0x152   : > { %v781_v27 = vpop.f32.mrf.mxu1 }
 0x153   : > { %v782_v0 = vadd.f32 %v1392_v57, %v781_v27  ;;  %v817_v57 = vld [vmem:[#allocation2] sm:$0xff] }
 0x155   : > { %v809_v8 = vmax.f32 %v782_v0, 0.0 }
 0x157   : > { %v791_v28 = vpop.f32.mrf.mxu2 }
 0x158   : > { %v792_v48 = vadd.f32 %v1400_v40, %v791_v28 }
 0x159   : > { %v1934_v29 = vpop.f32.mrf.mxu0 }
 0x15a   : > { %v783_v30 = vpop.f32.mrf.mxu1  ;;  %v813_v58 = vmax.f32 %v792_v48, 0.0  ;;  %v1354_v48 = vld [vmem:[#allocation4] sm:$0xff] }
 0x15b   : > { %v784_v1 = vadd.f32 %v1393_v60, %v783_v30  ;;  %v818_v60 = vld [vmem:[#allocation2 + $0x8] sm:$0xff] }
 0x15d   : > { %v810_v9 = vmax.f32 %v784_v1, 0.0 }
 0x15f   : > { %v793_v31 = vpop.f32.mrf.mxu2  ;;  %v823_v11 = vpack.c.bf16 %v810_v9, %v809_v8  ;;  %v1363_v8 = vld [vmem:[%s1781_s20] sm:$0xff] }
 0x160   : > { %v794_v50 = vadd.f32 %v1401_v41, %v793_v31  ;;  %v1375_v31 = vld [vmem:[%s2020_s1] sm:$0xff]  }
 0x161   : > { %v1936_v32 = vpop.f32.mrf.mxu0  ;;  %v1377_v33 = vunpack.c.h.bf16 %v1375_v31  ;;  %v1376_v37 = vunpack.c.l.bf16 %v1375_v31 }
 0x162   : > { %v786_v34 = vpop.f32.mrf.mxu1  ;;  %v814_v59 = vmax.f32 %v794_v50, 0.0  ;;  %v767_v39 = vadd.f32 %v1380_v26, %v1936_v32  ;;  %v1357_v50 = vld [vmem:[%s1775_s24 + $0x10] sm:$0xff] }
 0x163   : > { %v787_v54 = vadd.f32 %v1396_v44, %v786_v34  ;;  %v764_v41 = vadd.f32 %v1377_v33, %v1934_v29  ;;  %v762_v44 = vadd.f32 %v1376_v37, %v1932_v5  ;;  %v1360_v29 = vld [vmem:[%s1775_s24 + $0x28] sm:$0xff]  ;;  %v1358_v5 = vld [vmem:[%s1775_s24 + $0x18] sm:$0xff] }
 0x164   : > { %v825_v4 = vpack.c.bf16 %v814_v59, %v813_v58  ;;  %929 = vmatpush.bf16.msrb.mxu2 %v1360_v29 }
 0x165   : > { %v811_v62 = vmax.f32 %v787_v54, 0.0  ;;  %v1369_v54 = vld [vmem:[%s1781_s20 + $0x30] sm:$0xff] }
 0x167   : > { %v796_v35 = vpop.f32.mrf.mxu2 }
 0x168   : > { %v797_v42 = vadd.f32 %v1404_v36, %v796_v35  ;;  %930 = vmatpush.bf16.msrb.mxu2 %v1359_v49 }
 0x169   : > { %v768_v38 = vpop.f32.mrf.mxu0 }
 0x16a   : > { %v788_v47 = vpop.f32.mrf.mxu1  ;;  %v815_v51 = vmax.f32 %v797_v42, 0.0  ;;  %v769_v34 = vadd.f32 %v1381_v23, %v768_v38  ;;  %v802_v38 = vmax.f32 %v764_v41, 0.0 }
 0x16b   : > { %v789_v56 = vadd.f32 %v1397_v45, %v788_v47  ;;  %v803_v45 = vmax.f32 %v767_v39, 0.0  ;;  %v801_v47 = vmax.f32 %v762_v44, 0.0 }
 0x16c   : > { %v804_v42 = vmax.f32 %v769_v34, 0.0  ;;  %931 = vmatpush.bf16.msrb.mxu2 %v1358_v5 }
 0x16d   : > { %v812_v63 = vmax.f32 %v789_v56, 0.0  ;;  %v819_v32 = vpack.c.bf16 %v802_v38, %v801_v47  ;;  %v1367_v56 = vld [vmem:[%s1781_s20 + $0x20] sm:$0xff] }
 0x16f   : > { %v798_v46 = vpop.f32.mrf.mxu2  ;;  %v824_v7 = vpack.c.bf16 %v812_v63, %v811_v62 }
 0x170   : > { %v799_v52 = vadd.f32 %v1405_v43, %v798_v46  ;;  %v820_v46 = vpack.c.bf16 %v804_v42, %v803_v45  ;;  %932 = vmatpush.bf16.msrb.mxu2 %v1357_v50 }
 0x171   : > { %v771_v53 = vpop.f32.mrf.mxu0 }
 0x172   : > { %v816_v55 = vmax.f32 %v799_v52, 0.0  ;;  %v772_v27 = vadd.f32 %v1384_v19, %v771_v53  ;;  %v1355_v52 = vld [vmem:[%s1775_s24] sm:$0xff]  ;;  %v1370_v53 = vld [vmem:[%s1781_s20 + $0x38] sm:$0xff] }
 0x173   : > { %1012 = vmatpush.bf16.msra.mxu3 %v1370_v53 }
 0x174   : > { %v826_v61 = vpack.c.bf16 %v816_v55, %v815_v51  ;;  %v805_v40 = vmax.f32 %v772_v27, 0.0  ;;  %v1356_v51 = vld [vmem:[%s1775_s24 + $0x8] sm:$0xff] }
 0x175   : > { %933 = vmatpush.bf16.msrb.mxu2 %v1356_v51  ;;  %v1368_v55 = vld [vmem:[%s1781_s20 + $0x28] sm:$0xff] }
 0x176   : > { %833 = vmatpush.bf16.msrb.mxu1 %v826_v61 }
 0x177   : > { %1013 = vmatpush.bf16.msra.mxu3 %v1369_v54 }
 0x179   : > { %v773_v6 = vpop.f32.mrf.mxu0  ;;  %934 = vmatpush.bf16.msrb.mxu2 %v1355_v52 }
 0x17a   : > { %834 = vmatpush.bf16.msrb.mxu1 %v825_v4  ;;  %v774_v24 = vadd.f32 %v1385_v17, %v773_v6  ;;  %v1366_v4 = vld [vmem:[%s1781_s20 + $0x18] sm:$0xff]  ;;  %v1365_v6 = vld [vmem:[%s1781_s20 + $0x10] sm:$0xff]  ;;  %v1494_v17 = vld [vmem:[%s453_s18] ss:$0 sm:$0xff]  ;;  %s1649_s18 = smov 128  }
 0x17b   : > { %1014 = vmatpush.bf16.msra.mxu3 %v1368_v55 }
 0x17c   : > { %v806_v35 = vmax.f32 %v774_v24, 0.0 }
 0x17e   : > { %835 = vmatpush.bf16.msrb.mxu1 %v824_v7  ;;  %v821_v43 = vpack.c.bf16 %v806_v35, %v805_v40  ;;  %v1364_v7 = vld [vmem:[%s1781_s20 + $0x8] sm:$0xff]  ;;  %s1648_s20 = smov [#allocation10]  }
 0x17f   : > { %1015 = vmatpush.bf16.msra.mxu3 %v1367_v56  ;;  %s1049_s29 = sshll.u32 %s1648_s20, 4  ;;  %s1050_s29 = int_to_ptr.vmem [resolvable:$true] %s1049_s29 }
 0x181   : > { %v776_v13 = vpop.f32.mrf.mxu0 }
 0x182   : > { %836 = vmatpush.bf16.msrb.mxu1 %v823_v11  ;;  %v777_v21 = vadd.f32 %v1388_v15, %v776_v13 }
 0x183   : > { %1016 = vmatpush.bf16.msra.mxu3 %v1366_v4 }
 0x184   : > { %v807_v28 = vmax.f32 %v777_v21, 0.0 }
 0x187   : > { %1017 = vmatpush.bf16.msra.mxu3 %v1365_v6 }
 0x189   : > { %v778_v20 = vpop.f32.mrf.mxu0 }
 0x18a   : > { %v779_v25 = vadd.f32 %v1389_v18, %v778_v20  ;;  %v1027_v18 = vstv %s1026_s19 }
 0x18b   : > { %1018 = vmatpush.bf16.msra.mxu3 %v1364_v7  ;;  %vm1028_vm3 = vcmp.gt.s32.totalorder %v1027_v18, 0 }
 0x18c   : > { %v808_v30 = vmax.f32 %v779_v25, 0.0 }
 0x18e   : > { %v822_v36 = vpack.c.bf16 %v808_v30, %v807_v28 }
 0x18f   : > { %1019 = vmatpush.bf16.msra.mxu3 %v1363_v8 }
 0x190   : > { %837 = vmatpush.bf16.msrb.mxu1 %v822_v36 }
 0x194   : > { %838 = vmatpush.bf16.msrb.mxu1 %v821_v43 }
 0x198   : > { %839 = vmatpush.bf16.msrb.mxu1 %v820_v46 }
 0x19c   : > { %840 = vmatpush.bf16.msrb.mxu1 %v819_v32 }
 0x19f   : > { %841 = vmatmul.bf16.vlgmr.msrb.gmra.mxu1 %v1354_v48 }
 0x21c   : > { %v842_v58 = vpop.f32.mrf.mxu1 }
 0x21d   : > { %v847_v59 = vadd.f32 %v842_v58, %v817_v57 }
 0x21f   : > { %849 = vst [vmem:[#allocation2] sm:$0xff] %v847_v59  ;;  %v856_v63 = vadd.f32 %v847_v59, %v1808_v2 }
 0x224   : > { %v844_v61 = vpop.f32.mrf.mxu1 }
 0x225   : > { %v848_v62 = vadd.f32 %v844_v61, %v818_v60 }
 0x227   : > { %850 = vst [vmem:[#allocation2 + $0x8] sm:$0xff] %v848_v62  ;;  %v857_v0 = vadd.f32 %v848_v62, %v1810_v3 }
 0x229   : > { %v858_v1 = vpack.c.bf16 %v857_v0, %v856_v63 }
 0x22b   : > { %935 = vmatmul.bf16.vlgmr.msrb.gmra.mxu2 %v858_v1 }
 0x2ae   : > { %v936_v9 = vpop.f32.mrf.mxu2 }
 0x2af   : > { %v937_v11 = vadd.f32 %v1493_v10, %v936_v9 }
 0x2b1   : > { %v941_v14 = vmax.f32 %v937_v11, 0.0 }
 0x2b6   : > { %v938_v12 = vpop.f32.mrf.mxu2 }
 0x2b7   : > { %v939_v13 = vadd.f32 %v1493_v10, %v938_v12 }
 0x2b9   : > { %v942_v15 = vmax.f32 %v939_v13, 0.0 }
 0x2bb   : > { %v943_v16 = vpack.c.bf16 %v942_v15, %v941_v14 }
 0x2bd   : > { %1020 = vmatmul.bf16.vlgmr.msra.gmra.mxu3 %v943_v16 }
 0x340   : > { %v1021_v19 = vpop.f32.mrf.mxu3 }
 0x341   : > { %v1022_v21 = vadd.f32 %v1494_v17, %v1021_v19 }
 0x343   : > { %v1029_v22 = vmax.f32 %v1022_v21, 0.0 }
 0x345   : > { %v1031_v20 = vsel %vm1028_vm3, %v1029_v22, %v1022_v21 }
 0x346   : > { %v1033_v23 = vadd.f32 %v1031_v20, %v1808_v2 }
 0x348   : > { %1042 = vst [vmem:[#allocation10] sm:$0xff] %v1033_v23  ;;  %v1023_v24 = vpop.f32.mrf.mxu3 }
 0x349   : > { %v1024_v25 = vadd.f32 %v1494_v17, %v1023_v24 }
 0x34b   : > { %v1030_v26 = vmax.f32 %v1024_v25, 0.0 }
 0x34d   : > { %v1032_v27 = vsel %vm1028_vm3, %v1030_v26, %v1024_v25 }
 0x34e   : > { %v1034_v28 = vadd.f32 %v1032_v27, %v1810_v3 }
 0x350   : > { %1043 = vst [vmem:[#allocation10 + $0x8] sm:$0xff] %v1034_v28 }
 0x351   : > { %1420 = dma.vmem_to_hbm [thread:$0]  (%p1431_p1), %s1050_s29, 256, %s1052_s17, [#allocation7], %s1649_s18, %s1649_s18, %s1650_s16  }
 0x352   : > { %1616 = dma.done.wait (%p1431_p1), [#allocation7], 256  }
 0x353   : > { %1618 = vsyncadd (%p1431_p1), [#allocation7], 4294967040 }
 0x354 PF: > { %s25_s10 = sadd.s32 1, %s1641_s10   ;;  %s2042_s26 = sld [smem:[#allocation14_spill]] }
 0x355   : > { %p22_p2 = scmp.ge.s32.totalorder %s25_s10, 5   ;;  %s2043_s29 = sld [smem:[#allocation17_spill]] }
 0x356   : > { %s2044_s30 = sld [smem:[#allocation15_spill]]  ;;  %s2046_s27 = smov %s1625_s28 }
 0x357   : > { %s2045_s9 = sld [smem:[#allocation16_spill]]  ;;  %24 = sbr.rel (!%p22_p2) target bundleno = 9 (0x9), region = 133 }
 0x35a   : > { %s2047_s28 = smov %s2042_s26 }
 0x35c   :  { %1068 = vsyncpa [#allocation6], 1 }
 0x35d   :  { %1070 = vsyncpa [#allocation6 + $0x1], 1 }
 0x35e   :  { %1071 = vsyncpa [#allocation9], 1 }
 0x35f   :  { %1073 = vsyncpa [#allocation9 + $0x1], 1 }
 0x360   :  { %1074 = vsyncpa [#allocation7], 1 }
 0x361   :  { %1076 = vsyncpa [#allocation7 + $0x1], 1 }

</bundles_post_ra>
